<compile_context>
chip_gen: v7x
topology: tpu7x:2x2x1
jax: 0.10.0
libtpu: 0.0.40
codegen_flags: <defaults>
</compile_context>

<pallas_src>
import functools

import jax
import jax.numpy as jnp
from jax.experimental import pallas as pl
from jax.experimental.pallas import tpu as pltpu


def _pick_tile(m, cap):
    """Largest legal lane tile <= cap: multiple of 128, or full extent if m <= 128."""
    if m <= 128:
        return m
    if m % 128 == 0:
        return min(cap, m)
    return min(cap, max(128, (m // 128) * 128))


# ----------------------------------------------------------------------------
# Kernel A: fused encoder conv-as-matmul + ReLU + decoder 1x1 conv.
# Layout: pixels on the 128-lane axis, channel/class axes on sublanes, so loads,
# VPU work and stores are lane-dense and the (c_enc, tm) hidden activation never
# leaves VMEM.  HBM dtypes: patches bf16 in, scores bf16 out; compute f32.
# ----------------------------------------------------------------------------
def _enc_dec_kernel(p_ref, w1_ref, b1_ref, w2_ref, b2_ref, o_ref):
    p = p_ref[0].astype(jnp.float32)                                   # (K9, tm)
    # hidden = relu(enc_wT @ patches + b1)  -> (c_enc, tm)
    h = jnp.dot(w1_ref[...], p, preferred_element_type=jnp.float32)
    h = jnp.maximum(h + b1_ref[...], 0.0)
    # scores = dec_wT @ hidden + b2          -> (n_cls, tm)
    s = jnp.dot(w2_ref[...], h, preferred_element_type=jnp.float32)
    o_ref[0] = (s + b2_ref[...]).astype(o_ref.dtype)


def fused_encoder_decoder(patches, enc_wT, enc_b, dec_wT, dec_b):
    """patches: (B, 9C, M) bf16 -> scores (B, n_cls, M) bf16."""
    B, K9, M = patches.shape
    c_enc = enc_wT.shape[0]
    n_cls = dec_wT.shape[0]

    tm = _pick_tile(M, cap=8192)         # big tiles; per-step VMEM stays ~1-2 MiB
    grid_m = pl.cdiv(M, tm)

    return pl.pallas_call(
        _enc_dec_kernel,
        out_shape=jax.ShapeDtypeStruct((B, n_cls, M), jnp.bfloat16),
        grid_spec=pltpu.PrefetchScalarGridSpec(
            num_scalar_prefetch=0,
            grid=(B, grid_m),
            in_specs=[
                pl.BlockSpec((1, K9, tm), lambda b, i: (b, 0, i)),   # pixel tile
                pl.BlockSpec((c_enc, K9), lambda b, i: (0, 0)),      # resident weights
                pl.BlockSpec((c_enc, 1), lambda b, i: (0, 0)),
                pl.BlockSpec((n_cls, c_enc), lambda b, i: (0, 0)),
                pl.BlockSpec((n_cls, 1), lambda b, i: (0, 0)),
            ],
            out_specs=pl.BlockSpec((1, n_cls, tm), lambda b, i: (b, 0, i)),
        ),
        compiler_params=pltpu.CompilerParams(
            dimension_semantics=("parallel", "parallel"),
            vmem_limit_bytes=16 * 1024 * 1024),   # blocks are tiny; keep scoped VMEM lean
    )(patches, enc_wT, enc_b, dec_wT, dec_b)


# ----------------------------------------------------------------------------
# Kernel B: fused bilinear upsample + log_softmax, writing NCHW directly.
# Grid tiles (batch, out-rows, out-cols).  Per tile: one class-batched width
# matmul, per-class height matmuls against the row-slice of the interpolation
# matrix, then a stacked log_softmax over the class (slab) axis.
# ----------------------------------------------------------------------------
def _upsample_logsoftmax_kernel(s_ref, uw_ref, uhT_ref, o_ref):
    n_cls, Ho, Wo = s_ref.shape[1], s_ref.shape[2], s_ref.shape[3]
    x = s_ref[0].astype(jnp.float32)         # (n_cls, Ho, Wo)   bf16 -> f32
    uw = uw_ref[...]                         # (Wo, tw)  f32, column tile
    uhT = uhT_ref[...]                       # (th, Ho)  f32, row tile

    # Width resize with all classes batched into the M dim (one wide MXU matmul).
    xw = jnp.dot(x.reshape(n_cls * Ho, Wo), uw,
                 preferred_element_type=jnp.float32)        # (n_cls*Ho, tw)
    xw = xw.reshape(n_cls, Ho, xw.shape[-1])

    # Height resize per class (n_cls is small & static -> unrolled), then stack.
    y = jnp.stack(
        [jnp.dot(uhT, xw[c], preferred_element_type=jnp.float32)
         for c in range(n_cls)],
        axis=0)                                             # (n_cls, th, tw)

    # log_softmax over the class (slab) axis: elementwise VPU/EUP work, f32.
    m = jnp.max(y, axis=0, keepdims=True)
    lse = jnp.log(jnp.sum(jnp.exp(y - m), axis=0, keepdims=True))
    o_ref[0] = (y - m - lse).astype(o_ref.dtype)


def fused_upsample_logsoftmax(scores_nchw, u_w, u_hT):
    """scores: (B, n_cls, Ho, Wo) bf16 -> pred (B, n_cls, outH, outW) f32 (NCHW)."""
    B, n_cls, Ho, Wo = scores_nchw.shape
    outW = u_w.shape[1]
    outH = u_hT.shape[0]

    th = outH if outH <= 256 else 256        # multiple of 8 (or full extent)
    tw = outW if outW <= 512 else 512        # multiple of 128 (or full extent)
    grid = (B, pl.cdiv(outH, th), pl.cdiv(outW, tw))

    return pl.pallas_call(
        _upsample_logsoftmax_kernel,
        out_shape=jax.ShapeDtypeStruct((B, n_cls, outH, outW), jnp.float32),
        grid_spec=pltpu.PrefetchScalarGridSpec(
            num_scalar_prefetch=0,
            grid=grid,
            in_specs=[
                # low-res scores for batch b (index constant over i, j -> no re-DMA)
                pl.BlockSpec((1, n_cls, Ho, Wo), lambda b, i, j: (b, 0, 0, 0)),
                pl.BlockSpec((Wo, tw), lambda b, i, j: (0, j)),     # width interp cols
                pl.BlockSpec((th, Ho), lambda b, i, j: (i, 0)),     # height interp rows
            ],
            out_specs=pl.BlockSpec((1, n_cls, th, tw),
                                   lambda b, i, j: (b, 0, i, j)),
        ),
        compiler_params=pltpu.CompilerParams(
            dimension_semantics=("parallel", "parallel", "parallel"),
            vmem_limit_bytes=32 * 1024 * 1024),   # tiled working set stays well under v7x's 64 MiB
    )(scores_nchw, u_w, u_hT)


# ----------------------------------------------------------------------------
# Glue (XLA): transpose-free im2col and fixed bilinear-interpolation matrices.
# ----------------------------------------------------------------------------
def _im2col_3x3_s2(imgs_nchw):
    """3x3 / stride-2 / pad-1 patches as (B, C*9, Ho*Wo), channel-major / tap-minor.
    No transpose copy: taps are stacked after the channel axis and the final
    reshape is metadata-only."""
    B, C, H, W = imgs_nchw.shape
    Ho = (H + 2 - 3) // 2 + 1
    Wo = (W + 2 - 3) // 2 + 1
    xp = jnp.pad(imgs_nchw, ((0, 0), (0, 0), (1, 1), (1, 1)))
    taps = []
    for dh in range(3):
        for dw in range(3):
            taps.append(xp[:, :,
                           dh:dh + 2 * (Ho - 1) + 1:2,
                           dw:dw + 2 * (Wo - 1) + 1:2])      # (B, C, Ho, Wo)
    pat = jnp.stack(taps, axis=2)                            # (B, C, 9, Ho, Wo)
    return pat.reshape(B, C * 9, Ho * Wo), (Ho, Wo)


def _bilinear_matrix(n_in, n_out):
    """(n_in, n_out) matrix M with out = in @ M == bilinear resize
    (half-pixel centers / align_corners=False, edge clamp)."""
    cols = jnp.arange(n_out, dtype=jnp.float32)
    coord = (cols + 0.5) * (float(n_in) / float(n_out)) - 0.5
    lo = jnp.floor(coord)
    w = coord - lo
    lo_i = jnp.clip(lo, 0, n_in - 1).astype(jnp.int32)
    hi_i = jnp.clip(lo + 1.0, 0, n_in - 1).astype(jnp.int32)
    col_i = cols.astype(jnp.int32)
    m = jnp.zeros((n_in, n_out), jnp.float32)
    m = m.at[lo_i, col_i].add(1.0 - w)
    m = m.at[hi_i, col_i].add(w)
    return m


# ----------------------------------------------------------------------------
# The model: encoder -> decoder -> tuple([pred])
# ----------------------------------------------------------------------------
def make_params(c_in=4, c_enc=16, n_cls=8, seed=0):
    k = jax.random.PRNGKey(seed)
    k1, k2, k3, k4 = jax.random.split(k, 4)
    return {
        # encoder 3x3 conv weight in im2col layout (9*Cin, Cenc), tap-major rows
        "enc_w": 0.1 * jax.random.normal(k1, (9 * c_in, c_enc), jnp.float32),
        "enc_b": 0.1 * jax.random.normal(k2, (c_enc,), jnp.float32),
        # decoder 1x1 conv: (Cenc, n_cls)
        "dec_w": 0.1 * jax.random.normal(k3, (c_enc, n_cls), jnp.float32),
        "dec_b": 0.1 * jax.random.normal(k4, (n_cls,), jnp.float32),
    }


def segmentation_model2_forward(params, imgs_nchw, outSize=None):
    """Mirrors SegmentationModel2.forward: pred = decoder(encoder(imgs)); return (pred,)."""
    B, C, H, W = imgs_nchw.shape
    if outSize is None:
        outSize = (H, W)
    outH, outW = outSize

    # ----- encoder front-end: im2col in XLA (see TODO at top), rest fused in Pallas -----
    patches, (Ho, Wo) = _im2col_3x3_s2(imgs_nchw)        # (B, 9C, Ho*Wo)
    patches = patches.astype(jnp.bfloat16)               # halve HBM bytes into Kernel A

    c_enc = params["enc_w"].shape[1]
    # reorder enc_w rows from tap-major to channel-major/tap-minor (free, tiny)
    enc_w_cm = params["enc_w"].reshape(9, C, c_enc).transpose(1, 0, 2).reshape(9 * C, c_enc)
    enc_wT = jnp.transpose(enc_w_cm)                     # (c_enc, 9C), f32 resident
    dec_wT = jnp.transpose(params["dec_w"])              # (n_cls, c_enc)
    enc_b = params["enc_b"].reshape(-1, 1)
    dec_b = params["dec_b"].reshape(-1, 1)
    n_cls = dec_wT.shape[0]

    # Fused encoder conv + ReLU + decoder 1x1 conv: (B, n_cls, M) bf16 scores.
    scores = fused_encoder_decoder(patches, enc_wT, enc_b, dec_wT, dec_b)
    scores = scores.reshape(B, n_cls, Ho, Wo)            # metadata-only reshape

    # ----- decoder back-end: bilinear upsample + log_softmax fused, NCHW out -----
    u_w = _bilinear_matrix(Wo, outW)                     # (Wo, outW) f32
    u_hT = jnp.transpose(_bilinear_matrix(Ho, outH))     # (outH, Ho) f32
    pred = fused_upsample_logsoftmax(scores, u_w, u_hT)  # (B, n_cls, outH, outW) f32
    return (pred,)                                       # tuple([pred])


# ----------------------------------------------------------------------------
if __name__ == "__main__":
    B, C, H, W = 2, 4, 16, 16
    key = jax.random.PRNGKey(0)
    imgs = jax.random.normal(key, (B, C, H, W), jnp.float32)

    params = make_params(c_in=C, c_enc=16, n_cls=8, seed=0)

    fwd = jax.jit(functools.partial(segmentation_model2_forward, outSize=(H, W)))
    out = fwd(params, imgs)
    pred = jax.block_until_ready(out[0])

    assert isinstance(out, tuple) and len(out) == 1
    assert pred.shape == (B, 8, H, W)
    # log_softmax sanity: exp over the class axis sums to 1
    s = jnp.exp(pred).sum(axis=1)
    assert bool(jnp.allclose(s, 1.0, atol=1e-3))

    print("KERNEL_OK")
</pallas_src>

<mosaic_0001>
module attributes {stable_mosaic.version = 11 : i64} {
  func.func private @main(%arg0: i32) attributes {dimension_semantics = [#tpu.dimension_semantics<core_parallel>], iteration_bounds = array<i64: 2>, tpu.core_type = #tpu.core_type<sc_scalar_subcore>, window_params = []} {
    return
  }
}

module attributes {stable_mosaic.version = 11 : i64} {
  func.func private @main(%arg0: i32) attributes {dimension_semantics = [#tpu.dimension_semantics<core_parallel>], iteration_bounds = array<i64: 2>, tpu.core_type = #tpu.core_type<sc_scalar_subcore>, window_params = []} {
    return
  }
}

module attributes {stable_mosaic.version = 11 : i64} {
  func.func @_enc_dec_kernel(%arg0: i32, %arg1: i32, %arg2: memref<1x36x64xbf16, #tpu.memory_space<vmem>>, %arg3: memref<16x36xf32, #tpu.memory_space<vmem>>, %arg4: memref<16x1xf32, #tpu.memory_space<vmem>>, %arg5: memref<8x16xf32, #tpu.memory_space<vmem>>, %arg6: memref<8x1xf32, #tpu.memory_space<vmem>>, %arg7: memref<1x8x64xbf16, #tpu.memory_space<vmem>>) attributes {dimension_semantics = [#tpu.dimension_semantics<parallel>, #tpu.dimension_semantics<parallel>], iteration_bounds = array<i64: 2, 1>, scalar_prefetch = 0 : i64, scratch_operands = 0 : i64, tpu.core_type = #tpu.core_type<tc>, window_params = [{transform_indices = @transform_0, window_bounds = array<i64: 1, 36, 64>}, {pipeline_mode = #tpu.pipeline_mode<synchronous>, transform_indices = @transform_1, window_bounds = array<i64: 16, 36>}, {pipeline_mode = #tpu.pipeline_mode<synchronous>, transform_indices = @transform_2, window_bounds = array<i64: 16, 1>}, {pipeline_mode = #tpu.pipeline_mode<synchronous>, transform_indices = @transform_3, window_bounds = array<i64: 8, 16>}, {pipeline_mode = #tpu.pipeline_mode<synchronous>, transform_indices = @transform_4, window_bounds = array<i64: 8, 1>}, {transform_indices = @transform_5, window_bounds = array<i64: 1, 8, 64>}]} {
    %c0 = arith.constant 0 : index
    %c0_0 = arith.constant 0 : index
    %c0_1 = arith.constant 0 : index
    %0 = vector.load %arg2[%c0, %c0_0, %c0_1] : memref<1x36x64xbf16, #tpu.memory_space<vmem>>, vector<1x36x64xbf16>
    %1 = vector.shape_cast %0 : vector<1x36x64xbf16> to vector<36x64xbf16>
    %2 = arith.extf %1 : vector<36x64xbf16> to vector<36x64xf32>
    %c0_2 = arith.constant 0 : index
    %c0_3 = arith.constant 0 : index
    %3 = vector.load %arg3[%c0_2, %c0_3] : memref<16x36xf32, #tpu.memory_space<vmem>>, vector<16x36xf32>
    %cst = arith.constant dense<0.000000e+00> : vector<16x64xf32>
    %4 = tpu.matmul %3, %2, %cst {dimension_numbers = #tpu.dot_dimension_numbers<[1], [0], [0], [1], [0, 0, 1, 1], [], []>} : vector<16x36xf32>, vector<36x64xf32>, vector<16x64xf32> -> vector<16x64xf32>
    %c0_4 = arith.constant 0 : index
    %c0_5 = arith.constant 0 : index
    %5 = vector.load %arg4[%c0_4, %c0_5] : memref<16x1xf32, #tpu.memory_space<vmem>>, vector<16x1xf32>
    %6 = vector.broadcast %5 : vector<16x1xf32> to vector<16x64xf32>
    %7 = arith.addf %4, %6 : vector<16x64xf32>
    %cst_6 = arith.constant 0.000000e+00 : f32
    %8 = vector.broadcast %cst_6 : f32 to vector<16x64xf32>
    %9 = arith.maximumf %7, %8 : vector<16x64xf32>
    %c0_7 = arith.constant 0 : index
    %c0_8 = arith.constant 0 : index
    %10 = vector.load %arg5[%c0_7, %c0_8] : memref<8x16xf32, #tpu.memory_space<vmem>>, vector<8x16xf32>
    %cst_9 = arith.constant dense<0.000000e+00> : vector<8x64xf32>
    %11 = tpu.matmul %10, %9, %cst_9 {dimension_numbers = #tpu.dot_dimension_numbers<[1], [0], [0], [1], [0, 0, 1, 1], [], []>} : vector<8x16xf32>, vector<16x64xf32>, vector<8x64xf32> -> vector<8x64xf32>
    %c0_10 = arith.constant 0 : index
    %c0_11 = arith.constant 0 : index
    %12 = vector.load %arg6[%c0_10, %c0_11] : memref<8x1xf32, #tpu.memory_space<vmem>>, vector<8x1xf32>
    %13 = vector.broadcast %12 : vector<8x1xf32> to vector<8x64xf32>
    %14 = arith.addf %11, %13 : vector<8x64xf32>
    %15 = arith.truncf %14 : vector<8x64xf32> to vector<8x64xbf16>
    %c0_12 = arith.constant 0 : index
    %c0_13 = arith.constant 0 : index
    %c0_14 = arith.constant 0 : index
    %16 = vector.load %arg7[%c0_12, %c0_13, %c0_14] : memref<1x8x64xbf16, #tpu.memory_space<vmem>>, vector<1x8x64xbf16>
    %17 = vector.shape_cast %16 : vector<1x8x64xbf16> to vector<8x64xbf16>
    %18 = vector.shape_cast %15 : vector<8x64xbf16> to vector<1x8x64xbf16>
    tpu.vector_store %arg7[%c0_12, %c0_13, %c0_14], %18 {strides = array<i32>} : memref<1x8x64xbf16, #tpu.memory_space<vmem>>, vector<1x8x64xbf16>,
    return
  }
  func.func @transform_0(%arg0: i32, %arg1: i32) -> (i32, i32, i32) {
    %c0_i32 = arith.constant 0 : i32
    %c0_i32_0 = arith.constant 0 : i32
    return %arg0, %c0_i32, %arg1 : i32, i32, i32
  }
  func.func @transform_1(%arg0: i32, %arg1: i32) -> (i32, i32) {
    %c0_i32 = arith.constant 0 : i32
    %c0_i32_0 = arith.constant 0 : i32
    %c0_i32_1 = arith.constant 0 : i32
    return %c0_i32, %c0_i32_0 : i32, i32
  }
  func.func @transform_2(%arg0: i32, %arg1: i32) -> (i32, i32) {
    %c0_i32 = arith.constant 0 : i32
    %c0_i32_0 = arith.constant 0 : i32
    %c0_i32_1 = arith.constant 0 : i32
    return %c0_i32, %c0_i32_0 : i32, i32
  }
  func.func @transform_3(%arg0: i32, %arg1: i32) -> (i32, i32) {
    %c0_i32 = arith.constant 0 : i32
    %c0_i32_0 = arith.constant 0 : i32
    %c0_i32_1 = arith.constant 0 : i32
    return %c0_i32, %c0_i32_0 : i32, i32
  }
  func.func @transform_4(%arg0: i32, %arg1: i32) -> (i32, i32) {
    %c0_i32 = arith.constant 0 : i32
    %c0_i32_0 = arith.constant 0 : i32
    %c0_i32_1 = arith.constant 0 : i32
    return %c0_i32, %c0_i32_0 : i32, i32
  }
  func.func @transform_5(%arg0: i32, %arg1: i32) -> (i32, i32, i32) {
    %c0_i32 = arith.constant 0 : i32
    %c0_i32_0 = arith.constant 0 : i32
    return %arg0, %c0_i32, %arg1 : i32, i32, i32
  }
}

module attributes {stable_mosaic.version = 11 : i64} {
  func.func @_upsample_logsoftmax_kernel(%arg0: i32, %arg1: i32, %arg2: i32, %arg3: memref<1x8x8x8xbf16, #tpu.memory_space<vmem>>, %arg4: memref<8x16xf32, #tpu.memory_space<vmem>>, %arg5: memref<16x8xf32, #tpu.memory_space<vmem>>, %arg6: memref<1x8x16x16xf32, #tpu.memory_space<vmem>>) attributes {dimension_semantics = [#tpu.dimension_semantics<parallel>, #tpu.dimension_semantics<parallel>, #tpu.dimension_semantics<parallel>], iteration_bounds = array<i64: 2, 1, 1>, scalar_prefetch = 0 : i64, scratch_operands = 0 : i64, tpu.core_type = #tpu.core_type<tc>, window_params = [{transform_indices = @transform_0, window_bounds = array<i64: 1, 8, 8, 8>}, {transform_indices = @transform_1, window_bounds = array<i64: 8, 16>}, {transform_indices = @transform_2, window_bounds = array<i64: 16, 8>}, {transform_indices = @transform_3, window_bounds = array<i64: 1, 8, 16, 16>}]} {
    %c0 = arith.constant 0 : index
    %c0_0 = arith.constant 0 : index
    %c0_1 = arith.constant 0 : index
    %c0_2 = arith.constant 0 : index
    %0 = vector.load %arg3[%c0, %c0_0, %c0_1, %c0_2] : memref<1x8x8x8xbf16, #tpu.memory_space<vmem>>, vector<1x8x8x8xbf16>
    %1 = vector.shape_cast %0 : vector<1x8x8x8xbf16> to vector<8x8x8xbf16>
    %2 = arith.extf %1 : vector<8x8x8xbf16> to vector<8x8x8xf32>
    %c0_3 = arith.constant 0 : index
    %c0_4 = arith.constant 0 : index
    %3 = vector.load %arg4[%c0_3, %c0_4] : memref<8x16xf32, #tpu.memory_space<vmem>>, vector<8x16xf32>
    %c0_5 = arith.constant 0 : index
    %c0_6 = arith.constant 0 : index
    %4 = vector.load %arg5[%c0_5, %c0_6] : memref<16x8xf32, #tpu.memory_space<vmem>>, vector<16x8xf32>
    %5 = vector.shape_cast %2 : vector<8x8x8xf32> to vector<64x8xf32>
    %cst = arith.constant dense<0.000000e+00> : vector<64x16xf32>
    %6 = tpu.matmul %5, %3, %cst {dimension_numbers = #tpu.dot_dimension_numbers<[1], [0], [0], [1], [0, 0, 1, 1], [], []>} : vector<64x8xf32>, vector<8x16xf32>, vector<64x16xf32> -> vector<64x16xf32>
    %7 = vector.shape_cast %6 : vector<64x16xf32> to vector<8x8x16xf32>
    %8 = vector.extract_strided_slice %7 {offsets = [0, 0, 0], sizes = [1, 8, 16], strides = [1, 1, 1]} : vector<8x8x16xf32> to vector<1x8x16xf32>
    %9 = vector.shape_cast %8 : vector<1x8x16xf32> to vector<8x16xf32>
    %cst_7 = arith.constant dense<0.000000e+00> : vector<16x16xf32>
    %10 = tpu.matmul %4, %9, %cst_7 {dimension_numbers = #tpu.dot_dimension_numbers<[1], [0], [0], [1], [0, 0, 1, 1], [], []>} : vector<16x8xf32>, vector<8x16xf32>, vector<16x16xf32> -> vector<16x16xf32>
    %11 = vector.extract_strided_slice %7 {offsets = [1, 0, 0], sizes = [1, 8, 16], strides = [1, 1, 1]} : vector<8x8x16xf32> to vector<1x8x16xf32>
    %12 = vector.shape_cast %11 : vector<1x8x16xf32> to vector<8x16xf32>
    %cst_8 = arith.constant dense<0.000000e+00> : vector<16x16xf32>
    %13 = tpu.matmul %4, %12, %cst_8 {dimension_numbers = #tpu.dot_dimension_numbers<[1], [0], [0], [1], [0, 0, 1, 1], [], []>} : vector<16x8xf32>, vector<8x16xf32>, vector<16x16xf32> -> vector<16x16xf32>
    %14 = vector.extract_strided_slice %7 {offsets = [2, 0, 0], sizes = [1, 8, 16], strides = [1, 1, 1]} : vector<8x8x16xf32> to vector<1x8x16xf32>
    %15 = vector.shape_cast %14 : vector<1x8x16xf32> to vector<8x16xf32>
    %cst_9 = arith.constant dense<0.000000e+00> : vector<16x16xf32>
    %16 = tpu.matmul %4, %15, %cst_9 {dimension_numbers = #tpu.dot_dimension_numbers<[1], [0], [0], [1], [0, 0, 1, 1], [], []>} : vector<16x8xf32>, vector<8x16xf32>, vector<16x16xf32> -> vector<16x16xf32>
    %17 = vector.extract_strided_slice %7 {offsets = [3, 0, 0], sizes = [1, 8, 16], strides = [1, 1, 1]} : vector<8x8x16xf32> to vector<1x8x16xf32>
    %18 = vector.shape_cast %17 : vector<1x8x16xf32> to vector<8x16xf32>
    %cst_10 = arith.constant dense<0.000000e+00> : vector<16x16xf32>
    %19 = tpu.matmul %4, %18, %cst_10 {dimension_numbers = #tpu.dot_dimension_numbers<[1], [0], [0], [1], [0, 0, 1, 1], [], []>} : vector<16x8xf32>, vector<8x16xf32>, vector<16x16xf32> -> vector<16x16xf32>
    %20 = vector.extract_strided_slice %7 {offsets = [4, 0, 0], sizes = [1, 8, 16], strides = [1, 1, 1]} : vector<8x8x16xf32> to vector<1x8x16xf32>
    %21 = vector.shape_cast %20 : vector<1x8x16xf32> to vector<8x16xf32>
    %cst_11 = arith.constant dense<0.000000e+00> : vector<16x16xf32>
    %22 = tpu.matmul %4, %21, %cst_11 {dimension_numbers = #tpu.dot_dimension_numbers<[1], [0], [0], [1], [0, 0, 1, 1], [], []>} : vector<16x8xf32>, vector<8x16xf32>, vector<16x16xf32> -> vector<16x16xf32>
    %23 = vector.extract_strided_slice %7 {offsets = [5, 0, 0], sizes = [1, 8, 16], strides = [1, 1, 1]} : vector<8x8x16xf32> to vector<1x8x16xf32>
    %24 = vector.shape_cast %23 : vector<1x8x16xf32> to vector<8x16xf32>
    %cst_12 = arith.constant dense<0.000000e+00> : vector<16x16xf32>
    %25 = tpu.matmul %4, %24, %cst_12 {dimension_numbers = #tpu.dot_dimension_numbers<[1], [0], [0], [1], [0, 0, 1, 1], [], []>} : vector<16x8xf32>, vector<8x16xf32>, vector<16x16xf32> -> vector<16x16xf32>
    %26 = vector.extract_strided_slice %7 {offsets = [6, 0, 0], sizes = [1, 8, 16], strides = [1, 1, 1]} : vector<8x8x16xf32> to vector<1x8x16xf32>
    %27 = vector.shape_cast %26 : vector<1x8x16xf32> to vector<8x16xf32>
    %cst_13 = arith.constant dense<0.000000e+00> : vector<16x16xf32>
    %28 = tpu.matmul %4, %27, %cst_13 {dimension_numbers = #tpu.dot_dimension_numbers<[1], [0], [0], [1], [0, 0, 1, 1], [], []>} : vector<16x8xf32>, vector<8x16xf32>, vector<16x16xf32> -> vector<16x16xf32>
    %29 = vector.extract_strided_slice %7 {offsets = [7, 0, 0], sizes = [1, 8, 16], strides = [1, 1, 1]} : vector<8x8x16xf32> to vector<1x8x16xf32>
    %30 = vector.shape_cast %29 : vector<1x8x16xf32> to vector<8x16xf32>
    %cst_14 = arith.constant dense<0.000000e+00> : vector<16x16xf32>
    %31 = tpu.matmul %4, %30, %cst_14 {dimension_numbers = #tpu.dot_dimension_numbers<[1], [0], [0], [1], [0, 0, 1, 1], [], []>} : vector<16x8xf32>, vector<8x16xf32>, vector<16x16xf32> -> vector<16x16xf32>
    %32 = vector.shape_cast %10 : vector<16x16xf32> to vector<1x16x16xf32>
    %33 = vector.shape_cast %13 : vector<16x16xf32> to vector<1x16x16xf32>
    %34 = vector.shape_cast %16 : vector<16x16xf32> to vector<1x16x16xf32>
    %35 = vector.shape_cast %19 : vector<16x16xf32> to vector<1x16x16xf32>
    %36 = vector.shape_cast %22 : vector<16x16xf32> to vector<1x16x16xf32>
    %37 = vector.shape_cast %25 : vector<16x16xf32> to vector<1x16x16xf32>
    %38 = vector.shape_cast %28 : vector<16x16xf32> to vector<1x16x16xf32>
    %39 = vector.shape_cast %31 : vector<16x16xf32> to vector<1x16x16xf32>
    %40 = tpu.concatenate %32, %33, %34, %35, %36, %37, %38, %39 in 0 : vector<1x16x16xf32>, vector<1x16x16xf32>, vector<1x16x16xf32>, vector<1x16x16xf32>, vector<1x16x16xf32>, vector<1x16x16xf32>, vector<1x16x16xf32>, vector<1x16x16xf32> -> vector<8x16x16xf32>
    %cst_15 = arith.constant dense<0xFF800000> : vector<16x16xf32>
    %41 = vector.multi_reduction <maximumf>, %40, %cst_15 [0] : vector<8x16x16xf32> to vector<16x16xf32>
    %42 = vector.shape_cast %41 : vector<16x16xf32> to vector<1x16x16xf32>
    %43 = vector.broadcast %42 : vector<1x16x16xf32> to vector<8x16x16xf32>
    %44 = arith.subf %40, %43 : vector<8x16x16xf32>
    %45 = math.exp %44 : vector<8x16x16xf32>
    %cst_16 = arith.constant dense<0.000000e+00> : vector<16x16xf32>
    %46 = vector.multi_reduction <add>, %45, %cst_16 [0] : vector<8x16x16xf32> to vector<16x16xf32>
    %47 = vector.shape_cast %46 : vector<16x16xf32> to vector<1x16x16xf32>
    %48 = math.log %47 : vector<1x16x16xf32>
    %49 = vector.broadcast %42 : vector<1x16x16xf32> to vector<8x16x16xf32>
    %50 = arith.subf %40, %49 : vector<8x16x16xf32>
    %51 = vector.broadcast %48 : vector<1x16x16xf32> to vector<8x16x16xf32>
    %52 = arith.subf %50, %51 : vector<8x16x16xf32>
    %c0_17 = arith.constant 0 : index
    %c0_18 = arith.constant 0 : index
    %c0_19 = arith.constant 0 : index
    %c0_20 = arith.constant 0 : index
    %53 = vector.load %arg6[%c0_17, %c0_18, %c0_19, %c0_20] : memref<1x8x16x16xf32, #tpu.memory_space<vmem>>, vector<1x8x16x16xf32>
    %54 = vector.shape_cast %53 : vector<1x8x16x16xf32> to vector<8x16x16xf32>
    %55 = vector.shape_cast %52 : vector<8x16x16xf32> to vector<1x8x16x16xf32>
    tpu.vector_store %arg6[%c0_17, %c0_18, %c0_19, %c0_20], %55 {strides = array<i32>} : memref<1x8x16x16xf32, #tpu.memory_space<vmem>>, vector<1x8x16x16xf32>,
    return
  }
  func.func @transform_0(%arg0: i32, %arg1: i32, %arg2: i32) -> (i32, i32, i32, i32) {
    %c0_i32 = arith.constant 0 : i32
    %c0_i32_0 = arith.constant 0 : i32
    %c0_i32_1 = arith.constant 0 : i32
    %c0_i32_2 = arith.constant 0 : i32
    return %arg0, %c0_i32, %c0_i32_0, %c0_i32_1 : i32, i32, i32, i32
  }
  func.func @transform_1(%arg0: i32, %arg1: i32, %arg2: i32) -> (i32, i32) {
    %c0_i32 = arith.constant 0 : i32
    %c0_i32_0 = arith.constant 0 : i32
    return %c0_i32, %arg2 : i32, i32
  }
  func.func @transform_2(%arg0: i32, %arg1: i32, %arg2: i32) -> (i32, i32) {
    %c0_i32 = arith.constant 0 : i32
    %c0_i32_0 = arith.constant 0 : i32
    return %arg1, %c0_i32 : i32, i32
  }
  func.func @transform_3(%arg0: i32, %arg1: i32, %arg2: i32) -> (i32, i32, i32, i32) {
    %c0_i32 = arith.constant 0 : i32
    %c0_i32_0 = arith.constant 0 : i32
    return %arg0, %c0_i32, %arg1, %arg2 : i32, i32, i32, i32
  }
}

</mosaic_0001>

<bundles_post_ra>
// kernel: segmentation_model2_forward.2
= control target key start
LH: loop header
LB: loop body
LE: loop exit
PB: predicated region body
PF: predicated region fallthrough
CT: control target
= control target key end

     0   :  { %s679_s18 = smov 0   ;;  %s681_s19 = smov 0   ;;  %s736_s0 = inlined_call_operand.vmem [shape: bf16[2,36,64], index: 0, kind: input, shape index: {}]   ;;  %s737_s1 = inlined_call_operand.vmem [shape: f32[16,36], index: 1, kind: input, shape index: {}]   ;;  %s738_s2 = inlined_call_operand.vmem [shape: f32[16,1], index: 2, kind: input, shape index: {}]   ;;  %s739_s3 = inlined_call_operand.vmem [shape: f32[8,16], index: 3, kind: input, shape index: {}]   ;;  %s740_s4 = inlined_call_operand.vmem [shape: f32[8,1], index: 4, kind: input, shape index: {}]   ;;  %s741_s5 = inlined_call_operand.vmem [shape: bf16[2,8,64], index: 5, kind: output, shape index: {}]  }
   0x1   :  { %s683_s20 = smov 0  }
   0x2 LB: > { %s27_s21 = sadd.s32 1, %s639_s19  ;;  %p531_p0 = scmp.ge.s32.totalorder %s643_s20, 1  ;;  %s643_s20 = sphi %s683_s20, %s15_s20   ;;  %s639_s19 = sphi %s681_s19, %s743_s19   ;;  %s635_s18 = sphi %s679_s18, %s742_s18  }
   0x3   : > { %p29_p1 = scmp.ge.s32.totalorder %s27_s21, 2  ;;  %p206_p2 = scmp.lt.s32.totalorder %s643_s20, 3 }
   0x5   : > { %s745_s21 = smov (%p29_p1, %s27_s21), 0  ;;  %p207_p3 = pnand %p531_p0, %p206_p2 }
   0x6   : > { %p239_p4 = scmp.lt.s32.totalorder (!%p207_p3), %s635_s18, 1  ;;  %v264_v0 = vld [vmem:[%s737_s1] sm:$0xff] (!%p207_p3)  ;;  %vm278_vm0 = vcmask (!%p207_p3), 293888   ;;  %v645_v1 = vmov (!%p207_p3), 0   ;;  %v267_v3 = vld [vmem:[%s738_s2 + $0x8] sm:$0xff] (!%p207_p3)  ;;  %vm285_vm1 = vcmask (!%p207_p3), 1043456  }
   0x7   : > { %210 = sbr.rel (%p207_p3) target bundleno = 468 (0x1d4), region = 40  ;;  %569 = vmatprep.mubr.msk.f32.mxu0 (!%p207_p3), %vm278_vm0, %v264_v0  ;;  %619 = vset.pattern.permute.xlu0 (!%p207_p3), %v645_v1  ;;  %v266_v2 = vld [vmem:[%s738_s2] sm:$0xff] (!%p207_p3)  ;;  %v265_v8 = vld [vmem:[%s737_s1 + $0x8] sm:$0xff] (!%p207_p3)  ;;  %v646_v9 = vmov (!%p207_p3), 0.0|0.0   ;;  %vm647_vm2 = vmmov (!%p207_p3), 0   ;;  %v648_v10 = vmov (!%p207_p3), 0.0  }
   0x8   : > { %270 = vperm.xlu0 (!%p207_p3), %619, %v266_v2   ;;  %620 = vset.pattern.permute.xlu1 (!%p207_p3), %v645_v1  ;;  %v367_v11 = vld [vmem:[%s740_s4] sm:$0xff] (!%p207_p3)  ;;  %vm373_vm3 = vcmask (!%p207_p3), 130048   ;;  %vm448_vm4 = vcmask (!%p207_p3), 519168  }
   0x9   : > { %587 = vmatprep.subr.bf16.mxu1 (!%p207_p3), %v646_v9  ;;  %576 = vmatprep.mubr.msk.f32.mxu1 (!%p207_p3), %vm647_vm2, %v648_v10  ;;  %v366_v21 = vld [vmem:[%s739_s3] sm:$0xff] (!%p207_p3) }
   0xa   : > { %370 = vperm.xlu1 (!%p207_p3), %620, %v367_v11  }
   0xc   : > { %275 = vperm.xlu0 (!%p207_p3), %619, %v267_v3  }
   0xe   : > { %s747_s18 = smov (!%p239_p4, %s635_s18), 1 }
   0xf   : > { %s590_s28 = smul.u32 20, %s747_s18  ;;  %s533_s13 = sshll.u32 %s747_s18, 2 }
  0x10   : > { %s253_s16 = scalar_lea.vmem %s741_s5, %s533_s13 }
  0x11   : > { %s246_s6 = scalar_lea.vmem %s736_s0, %s590_s28 }
  0x12   : > { %v541_v4 = vld [vmem:[%s246_s6] sm:$0xff]   ;;  %v258_v5 = vld [vmem:[%s246_s6 + $0x10] sm:$0x3]  ;;  %v548_v6 = vld [vmem:[%s246_s6 + $0x8] sm:$0xff]  }
  0x13   : > { %580 = vmatprep.subr.bf16.mxu0 %v541_v4  ;;  %v263_v7 = vunpack.c.l.bf16 %v258_v5 }
  0x14   : > { %582 = vmatpush3.bf16.msra.mxu0 %v541_v4 }
  0x15   : > { %584 = vmatprep.subr.bf16.mxu0 %v548_v6 }
  0x18   : > { %586 = vmatpush3.bf16.msra.mxu0 %v548_v6 }
  0x19   : > { %567 = vmatprep.subr.msk.mxu0 %vm285_vm1, %v263_v7 }
  0x1c   : > { %568 = vmatpush3.msk.msra.mxu0 %vm285_vm1, %v263_v7 }
  0x1d   : > { %570 = vmatmul.mubr.msk.f32.vlgmr.msra.gmra.mrb[0].mxu0 %vm278_vm0, %v265_v8 }
  0x87   : > { %v271_v12 = vpop.permute.xlu0 %270 }
  0x89   : > { %v371_v22 = vpop.permute.xlu1 %370 }
  0x8b   : > { %v276_v13 = vpop.permute.xlu0 %275 }
  0xf0   : > { %v571_v14 = vpop.f32.mrb[0].mxu0 }
  0xf1   : > { %v361_v15 = vadd.f32 %v571_v14, %v276_v13  ;;  %v355_v16 = vpop.f32.mrb[1].mxu0 }
  0xf2   : > { %v356_v17 = vadd.f32 %v355_v16, %v271_v12 }
  0xf3   : > { %v365_v18 = vmax.f32 %v361_v15, 0.0 }
  0xf4   : > { %v364_v19 = vmax.f32 %v356_v17, 0.0 }
  0xf6   : > { %v588_v20 = vpack.c.bf16 %v365_v18, %v364_v19 }
  0xf8   : > { %589 = vmatpush3.bf16.msra.mxu1 %v588_v20 }
  0xfb   : > { %577 = vmatmul.mubr.msk.f32.vlgmr.msra.gmra.mrb[0].mxu1 %vm373_vm3, %v366_v21 }
 0x1ce   : > { %v443_v23 = vpop.f32.mrb[0].mxu1 }
 0x1cf   : > { %v444_v24 = vadd.f32 %v443_v23, %v371_v22  ;;  %v578_v25 = vpop.f32.mrb[1].mxu1 }
 0x1d1   : > { %v447_v26 = vpack.c.bf16 %v444_v24, %v444_v24 }
 0x1d3   : > { %449 = vst.msk [vmem:[%s253_s16] sm:$0xf] %vm448_vm4, %v447_v26 }
 0x1d4 PF: > { %s15_s20 = sadd.s32 1, %s643_s20   ;;  %s742_s18 = smov %s639_s19 }
 0x1d5   : > { %p12_p5 = scmp.ge.s32.totalorder %s15_s20, 4   ;;  %s743_s19 = smov %s745_s21 }
 0x1d7   :  { %14 = sbr.rel (!%p12_p5) target bundleno = 2 (0x2), region = 70 }

// kernel: segmentation_model2_forward.3
= control target key start
LH: loop header
LB: loop body
LE: loop exit
PB: predicated region body
PF: predicated region fallthrough
CT: control target
= control target key end

     0   :  { %8 = vsyncpa [#allocation3], 0  ;;  %s1863_s0 = inlined_call_operand.vmem [shape: bf16[2,8,8,8], index: 0, kind: input, shape index: {}]   ;;  %s1864_s1 = inlined_call_operand.vmem [shape: f32[8,16], index: 1, kind: input, shape index: {}]   ;;  %s1865_s2 = inlined_call_operand.vmem [shape: f32[16,8], index: 2, kind: input, shape index: {}]   ;;  %s1866_s3 = inlined_call_operand.hbm [shape: f32[2,8,16,16], index: 3, kind: output, shape index: {}]  }
   0x1   :  { %10 = vsyncpa [#allocation3 + $0x1], 0  ;;  %s1599_s12 = smov 0   ;;  %s1601_s13 = smov 0  }
   0x2   :  { %s1603_s14 = smov 0   ;;  %s1605_s15 = smov 0  }
   0x3   :  { %s1607_s16 = smov 0   ;;  %s1609_s17 = smov 0  }
   0x4 LB: > { %s1256_s18 = sadd.s32 4294967295, %s1574_s17   ;;  %s1257_s19 = sadd.s32 4294967294, %s1574_s17   ;;  %s1574_s17 = sphi %s1609_s17, %s16_s17   ;;  %s1570_s16 = sphi %s1607_s16, %s1873_s16   ;;  %s1566_s15 = sphi %s1605_s15, %s1872_s15   ;;  %s1562_s14 = sphi %s1603_s14, %s1871_s14   ;;  %s1558_s13 = sphi %s1601_s13, %s1870_s13   ;;  %s1554_s12 = sphi %s1599_s12, %s1869_s12  }
   0x5   : > { %s35_s20 = sadd.s32 1, %s1570_s16  ;;  %s124_s21 = sadd.s32 1, %s1562_s14 }
   0x6   : > { %p37_p0 = scmp.ge.s32.totalorder %s35_s20, 2  ;;  %p134_p1 = scmp.ne.s32.totalorder %s1562_s14, %s1558_s13 }
   0x7   : > { %p135_p2 = scmp.eq.s32.totalorder %s1256_s18, 1  ;;  %p140_p3 = scmp.ne.s32.totalorder %s1558_s13, %s1554_s12 }
   0x8   : > { %s1875_s20 = smov (%p37_p0, %s35_s20), 0  ;;  %p141_p5 = scmp.eq.s32.totalorder %s1257_s19, 1 }
   0x9   : > { %p1639_p4 = por %p135_p2, %p134_p1  ;;  %s117_s23 = ssub.s32 %s1570_s16, %s1875_s20 }
   0xa   : > { %p1262_p6 = scmp.ge.s32.totalorder %s1574_s17, 1  ;;  %p122_p7 = scmp.eq.s32.totalorder %s117_s23, 0 }
   0xb   : > { %p1646_p8 = por %p141_p5, %p140_p3  ;;  %p183_p9 = scmp.lt.s32.totalorder %s1574_s17, 3 }
   0xc   : > { %s1652_s25 = scalar_select %p122_p7, %s1562_s14, %s124_s21  }
   0xd   : > { %p184_p10 = pnand %p1262_p6, %p183_p9 }
   0xe   : > { %v248_v0 = vld [vmem:[%s1864_s1] sm:$0xff] (!%p184_p10)  ;;  %p216_p11 = scmp.lt.s32.totalorder (!%p184_p10), %s1566_s15, 1  ;;  %vm251_vm0 = vcmask (!%p184_p10), 64512   ;;  %v250_v16 = vld [vmem:[%s1865_s2 + $0x8] sm:$0xff] (!%p184_p10)  ;;  %vm987_vm1 = vcmask (!%p184_p10), 130048   ;;  %s213_s10 = sand.u32 (!%p184_p10), 1, %s1558_s13  }
   0xf   : > { %187 = sbr.rel (%p184_p10) target bundleno = 554 (0x22a), region = 32  ;;  %1349 = vmatprep.subr.mxu0 (!%p184_p10), %v248_v0  ;;  %v249_v13 = vld [vmem:[%s1865_s2] sm:$0xff] (!%p184_p10)  ;;  %s1263_s11 = sshll.u32 (!%p184_p10), %s213_s10, 7 }
  0x10   : > { %1350 = vmatpush3.msra.mxu0 (!%p184_p10), %v248_v0  ;;  %1365 = vmatprep.mubr.msk.f32.mxu1 (!%p184_p10), %vm251_vm0, %v249_v13  ;;  %s215_s18 = scalar_lea.vmem (!%p184_p10), [#allocation2], %s1263_s11  ;;  %s1296_s19 = sshll.u32 (!%p184_p10), %s1566_s15, 11 }
  0x11   : > { %s1149_s21 = sshll.u32 (!%p184_p10), %s215_s18, 4  ;;  %s1799_s27 = scalar_lea.hbm (!%p184_p10), %s1866_s3, %s1296_s19  ;;  %s1801_s21 = int_to_ptr.vmem [resolvable:$true] %s1149_s21 }
  0x16   : > { %s217_s28 = scalar_select %p216_p11, %s1566_s15, 1 }
  0x17   : > { %s1817_s15 = scalar_lea.sflag [#allocation3], %s213_s10 }
  0x18   : > { %s1295_s29 = sshll.u32 %s217_s28, 5  ;;  %s1496_s28 = scalar_lea.vmem %s1801_s21, 2048 }
  0x19   : > { %s220_s5 = scalar_lea.vmem %s1863_s0, %s1295_s29  ;;  %p1497_p12 = scmp.ne.s32.totalorder %s1801_s21, %s1496_s28 }
  0x1a   : > { %v1298_v1 = vld [vmem:[%s220_s5] sm:$0xff]   ;;  %v1313_v2 = vld [vmem:[%s220_s5 + $0x8] sm:$0xff]   ;;  %v1314_v6 = vld [vmem:[%s220_s5 + $0x10] sm:$0xff]   ;;  %s1576_s29 = smov [#allocation2]  }
  0x1b   : > { %v1299_v3 = vunpack.c.l.bf16 %v1298_v1  ;;  %v1300_v4 = vunpack.c.h.bf16 %v1298_v1  ;;  %v1303_v5 = vunpack.c.l.bf16 %v1313_v2  ;;  %v1304_v7 = vunpack.c.h.bf16 %v1313_v2  ;;  %v1315_v9 = vld [vmem:[%s220_s5 + $0x18] sm:$0xff]   ;;  %p1498_p13 = pnand %p1497_p12, %p1639_p4  ;;  %s1500_s30 = sshll.u32 %s1576_s29, 4  ;;  %s1501_s30 = int_to_ptr.vmem [resolvable:$false] %s1500_s30 }
  0x1c   : > { %v1307_v8 = vunpack.c.l.bf16 %v1314_v6  ;;  %v1308_v10 = vunpack.c.h.bf16 %v1314_v6  ;;  %v1311_v11 = vunpack.c.l.bf16 %v1315_v9  ;;  %v1312_v12 = vunpack.c.h.bf16 %v1315_v9  ;;  %s1502_s4 = scalar_lea.vmem %s1501_s30, 4096  ;;  %p1503_p1 = scmp.lt.s32.totalorder %s1801_s21, %s1501_s30 }
  0x1d   : > { %1351 = vmatprep.mubr.msk.f32.mxu0 %vm251_vm0, %v1299_v3  ;;  %p1499_p0 = pneg %p1498_p13  ;;  %p1504_p2 = scmp.lt.s32.totalorder %s1502_s4, %s1496_s28 }
  0x1e   : > { %1352 = vmatmul.mubr.msk.f32.vlgmr.msra.gmra.mrb[0].mxu0 %vm251_vm0, %v1300_v4 }
  0x1f   : > { %1354 = vmatprep.mubr.msk.f32.mxu0 %vm251_vm0, %v1303_v5  ;;  %p1505_p3 = por %p1504_p2, %p1503_p1 }
  0x21   : > { %p1506_p5 = pnand %p1505_p3, %p1499_p0 }
  0x22   : > { %1355 = vmatmul.mubr.msk.f32.gmra.mrb[2].mxu0 %vm251_vm0, %v1304_v7 }
  0x23   : > { %1357 = vmatprep.mubr.msk.f32.mxu0 %vm251_vm0, %v1307_v8 }
  0x26   : > { %1358 = vmatmul.mubr.msk.f32.gmra.mrb[4].mxu0 %vm251_vm0, %v1308_v10 }
  0x27   : > { %1360 = vmatprep.mubr.msk.f32.mxu0 %vm251_vm0, %v1311_v11 }
  0x2a   : > { %1361 = vmatmul.mubr.msk.f32.gmra.mrb[6].mxu0 %vm251_vm0, %v1312_v12 }
  0x2b   : > { %1385 = vmatprep.mubr.msk.f32.mxu0 %vm251_vm0, %v249_v13 }
  0xf1   : > { %v1353_v14 = vpop.f32.mrb[0].mxu0 }
  0xf2   : > { %v342_v15 = vpop.f32.mrb[1].mxu0 }
  0xf3   : > { %1363 = vmatprep.subr.mxu1 %v342_v15 }
  0xf4   : > { %1364 = vmatpush3.msra.mxu1 %v342_v15 }
  0xf5   : > { %v1356_v17 = vpop.f32.mrb[2].mxu0  ;;  %1366 = vmatmul.mubr.msk.f32.vlgmr.msra.gmra.mrb[0].mxu1 %vm251_vm0, %v250_v16  ;;  %1368 = vmatprep.subr.mxu1 %v1353_v14 }
  0xf6   : > { %v352_v18 = vpop.f32.mrb[3].mxu0  ;;  %1369 = vmatpush3.msra.mxu1 %v1353_v14  ;;  %1370 = vmatprep.mubr.msk.f32.mxu1 %vm251_vm0, %v249_v13 }
  0xf7   : > { %1373 = vmatprep.subr.mxu1 %v352_v18 }
  0xf9   : > { %v1359_v19 = vpop.f32.mrb[4].mxu0  ;;  %1371 = vmatmul.mubr.msk.f32.vlgmr.msra.gmra.mrb[2].mxu1 %vm251_vm0, %v250_v16 }
  0xfa   : > { %1374 = vmatpush3.msra.mxu1 %v352_v18  ;;  %v362_v20 = vpop.f32.mrb[5].mxu0  ;;  %1375 = vmatprep.mubr.msk.f32.mxu1 %vm251_vm0, %v249_v13 }
  0xfb   : > { %1378 = vmatprep.subr.mxu1 %v1356_v17  ;;  %1383 = vmatprep.subr.mxu0 %v362_v20 }
  0xfc   : > { %1384 = vmatpush3.msra.mxu0 %v362_v20 }
  0xfd   : > { %v1362_v21 = vpop.f32.mrb[6].mxu0  ;;  %1376 = vmatmul.mubr.msk.f32.vlgmr.msra.gmra.mrb[4].mxu1 %vm251_vm0, %v250_v16  ;;  %1386 = vmatmul.mubr.msk.f32.vlgmr.msra.gmra.mrb[8].mxu0 %vm251_vm0, %v250_v16 }
  0xfe   : > { %1379 = vmatpush3.msra.mxu1 %v1356_v17  ;;  %v372_v22 = vpop.f32.mrb[7].mxu0  ;;  %1380 = vmatprep.mubr.msk.f32.mxu1 %vm251_vm0, %v249_v13 }
  0xff   : > { %1388 = vmatprep.subr.mxu1 %v1359_v19  ;;  %1393 = vmatprep.subr.mxu0 %v372_v22 }
 0x100   : > { %1394 = vmatpush3.msra.mxu0 %v372_v22  ;;  %1395 = vmatprep.mubr.msk.f32.mxu0 %vm251_vm0, %v249_v13 }
 0x101   : > { %1381 = vmatmul.mubr.msk.f32.vlgmr.msra.gmra.mrb[6].mxu1 %vm251_vm0, %v250_v16  ;;  %1396 = vmatmul.mubr.msk.f32.vlgmr.msra.gmra.mrb[10].mxu0 %vm251_vm0, %v250_v16 }
 0x102   : > { %1389 = vmatpush3.msra.mxu1 %v1359_v19  ;;  %1390 = vmatprep.mubr.msk.f32.mxu1 %vm251_vm0, %v249_v13 }
 0x103   : > { %1398 = vmatprep.subr.mxu1 %v1362_v21 }
 0x105   : > { %1391 = vmatmul.mubr.msk.f32.vlgmr.msra.gmra.mrb[8].mxu1 %vm251_vm0, %v250_v16 }
 0x106   : > { %1399 = vmatpush3.msra.mxu1 %v1362_v21  ;;  %1400 = vmatprep.mubr.msk.f32.mxu1 %vm251_vm0, %v249_v13 }
 0x109   : > { %1401 = vmatmul.mubr.msk.f32.vlgmr.msra.gmra.mrb[10].mxu1 %vm251_vm0, %v250_v16 }
 0x1c8   : > { %v1367_v23 = vpop.f32.mrb[0].mxu1 }
 0x1c9   : > { %v453_v24 = vpop.f32.mrb[1].mxu1  ;;  %v1003_v29 = vsel %vm987_vm1, %v1367_v23, -inf }
 0x1ca   : > { %v988_v34 = vsel %vm987_vm1, %v453_v24, -inf }
 0x1cc   : > { %v1372_v25 = vpop.f32.mrb[2].mxu1 }
 0x1cd   : > { %v528_v26 = vpop.f32.mrb[3].mxu1  ;;  %v1004_v39 = vsel %vm987_vm1, %v1372_v25, -inf }
 0x1ce   : > { %v989_v43 = vsel %vm987_vm1, %v528_v26, -inf }
 0x1d0   : > { %v1377_v27 = vpop.f32.mrb[4].mxu1  ;;  %v1387_v28 = vpop.f32.mrb[8].mxu0 }
 0x1d1   : > { %v1005_v30 = vsel %vm987_vm1, %v1377_v27, -inf  ;;  %v603_v31 = vpop.f32.mrb[5].mxu1  ;;  %v1009_v32 = vsel %vm987_vm1, %v1387_v28, -inf  ;;  %v753_v33 = vpop.f32.mrb[9].mxu0 }
 0x1d2   : > { %v1006_v35 = vmax.f32 %v1003_v29, %v1005_v30  ;;  %v990_v36 = vsel %vm987_vm1, %v603_v31, -inf  ;;  %v994_v37 = vsel %vm987_vm1, %v753_v33, -inf }
 0x1d3   : > { %v991_v38 = vmax.f32 %v988_v34, %v990_v36 }
 0x1d4   : > { %v1010_v40 = vmax.f32 %v1006_v35, %v1009_v32  ;;  %v1382_v41 = vpop.f32.mrb[6].mxu1  ;;  %v1397_v42 = vpop.f32.mrb[10].mxu0 }
 0x1d5   : > { %v995_v44 = vmax.f32 %v991_v38, %v994_v37  ;;  %v1007_v45 = vsel %vm987_vm1, %v1382_v41, -inf  ;;  %v1013_v46 = vsel %vm987_vm1, %v1397_v42, -inf  ;;  %v678_v47 = vpop.f32.mrb[7].mxu1  ;;  %v903_v48 = vpop.f32.mrb[11].mxu0 }
 0x1d6   : > { %v1008_v49 = vmax.f32 %v1004_v39, %v1007_v45  ;;  %v1014_v50 = vmax.f32 %v1010_v40, %v1013_v46  ;;  %v992_v51 = vsel %vm987_vm1, %v678_v47, -inf  ;;  %v998_v52 = vsel %vm987_vm1, %v903_v48, -inf }
 0x1d7   : > { %v993_v53 = vmax.f32 %v989_v43, %v992_v51  ;;  %v999_v54 = vmax.f32 %v995_v44, %v998_v52 }
 0x1d8   : > { %v1392_v55 = vpop.f32.mrb[8].mxu1 }
 0x1d9   : > { %v1011_v56 = vsel %vm987_vm1, %v1392_v55, -inf  ;;  %v828_v57 = vpop.f32.mrb[9].mxu1 }
 0x1da   : > { %v1012_v58 = vmax.f32 %v1008_v49, %v1011_v56  ;;  %v996_v59 = vsel %vm987_vm1, %v828_v57, -inf }
 0x1db   : > { %v997_v60 = vmax.f32 %v993_v53, %v996_v59 }
 0x1dc   : > { %v1402_v61 = vpop.f32.mrb[10].mxu1 }
 0x1dd   : > { %v1015_v62 = vsel %vm987_vm1, %v1402_v61, -inf  ;;  %v978_v63 = vpop.f32.mrb[11].mxu1 }
 0x1de   : > { %v1016_v0 = vmax.f32 %v1012_v58, %v1015_v62  ;;  %v1000_v1 = vsel %vm987_vm1, %v978_v63, -inf }
 0x1df   : > { %v1001_v2 = vmax.f32 %v997_v60, %v1000_v1 }
 0x1e0   : > { %v1017_v3 = vmax.f32 %v1014_v50, %v1016_v0 }
 0x1e1   : > { %v1002_v4 = vmax.f32 %v999_v54, %v1001_v2 }
 0x1e2   : > { %v1708_v5 = vsub.f32 %v1367_v23, %v1017_v3  ;;  %v1710_v6 = vsub.f32 %v1372_v25, %v1017_v3  ;;  %v1712_v7 = vsub.f32 %v1377_v27, %v1017_v3  ;;  %v1714_v8 = vsub.f32 %v1382_v41, %v1017_v3 }
 0x1e3   : > { %v1716_v9 = vsub.f32 %v1387_v28, %v1017_v3  ;;  %v1718_v10 = vsub.f32 %v1392_v55, %v1017_v3  ;;  %v1720_v11 = vsub.f32 %v1397_v42, %v1017_v3  ;;  %v1722_v12 = vsub.f32 %v1402_v61, %v1017_v3 }
 0x1e4   : > { %v1036_v13 = vmul.f32 1.442695, %v1708_v5  ;;  %v1040_v14 = vmul.f32 1.442695, %v1710_v6  ;;  %v1044_v15 = vmul.f32 1.442695, %v1712_v7  ;;  %v1727_v16 = vsub.f32 %v453_v24, %v1002_v4 }
 0x1e5   : > { %v1048_v17 = vmul.f32 1.442695, %v1714_v8  ;;  %v1730_v18 = vsub.f32 %v528_v26, %v1002_v4  ;;  %v1052_v19 = vmul.f32 1.442695, %v1716_v9  ;;  %v1056_v20 = vmul.f32 1.442695, %v1718_v10 }
 0x1e6   : > { %1460 = vpow2.f32 %v1036_v13  ;;  %v1734_v21 = vsub.f32 %v603_v31, %v1002_v4  ;;  %v1736_v22 = vsub.f32 %v678_v47, %v1002_v4  ;;  %v1738_v23 = vsub.f32 %v753_v33, %v1002_v4 }
 0x1e7   : > { %1462 = vpow2.f32 %v1040_v14  ;;  %v1740_v25 = vsub.f32 %v828_v57, %v1002_v4  ;;  %v1060_v24 = vmul.f32 1.442695, %v1720_v11  ;;  %v1743_v27 = vsub.f32 %v903_v48, %v1002_v4 }
 0x1e8   : > { %1464 = vpow2.f32 %v1044_v15  ;;  %v1745_v26 = vsub.f32 %v978_v63, %v1002_v4  ;;  %v1064_v28 = vmul.f32 1.442695, %v1722_v12  ;;  %v1034_v29 = vmul.f32 1.442695, %v1727_v16 }
 0x1e9   : > { %1466 = vpow2.f32 %v1048_v17  ;;  %v1038_v30 = vmul.f32 1.442695, %v1730_v18  ;;  %v1042_v31 = vmul.f32 1.442695, %v1734_v21  ;;  %v1046_v32 = vmul.f32 1.442695, %v1736_v22 }
 0x1ea   : > { %1468 = vpow2.f32 %v1052_v19  ;;  %v1050_v33 = vmul.f32 1.442695, %v1738_v23  ;;  %v1054_v37 = vmul.f32 1.442695, %v1740_v25  ;;  %v1058_v42 = vmul.f32 1.442695, %v1743_v27 }
 0x1eb   : > { %1470 = vpow2.f32 %v1056_v20  ;;  %v1062_v47 = vmul.f32 1.442695, %v1745_v26 }
 0x1ec   : > { %1472 = vpow2.f32 %v1060_v24 }
 0x1ed   : > { %1474 = vpow2.f32 %v1064_v28 }
 0x1ee   : > { %1476 = vpow2.f32 %v1034_v29 }
 0x1ef   : > { %1478 = vpow2.f32 %v1038_v30 }
 0x1f0   : > { %v1461_v34 = vpop.eup %1460  ;;  %1480 = vpow2.f32 %v1042_v31 }
 0x1f1   : > { %v1463_v35 = vpop.eup %1462  ;;  %v1081_v36 = vsel %vm987_vm1, %v1461_v34, 0.0  ;;  %1482 = vpow2.f32 %v1046_v32 }
 0x1f2   : > { %v1465_v38 = vpop.eup %1464  ;;  %v1082_v39 = vsel %vm987_vm1, %v1463_v35, 0.0  ;;  %1484 = vpow2.f32 %v1050_v33 }
 0x1f3   : > { %v1467_v40 = vpop.eup %1466  ;;  %v1083_v41 = vadd.f32 %v1082_v39, %v1081_v36  ;;  %v1084_v44 = vsel %vm987_vm1, %v1465_v38, 0.0  ;;  %1486 = vpow2.f32 %v1054_v37 }
 0x1f4   : > { %v1469_v43 = vpop.eup %1468  ;;  %v1086_v49 = vsel %vm987_vm1, %v1467_v40, 0.0  ;;  %1488 = vpow2.f32 %v1058_v42 }
 0x1f5   : > { %v1471_v45 = vpop.eup %1470  ;;  %v1085_v46 = vadd.f32 %v1084_v44, %v1083_v41  ;;  %v1088_v53 = vsel %vm987_vm1, %v1469_v43, 0.0  ;;  %1490 = vpow2.f32 %v1062_v47 }
 0x1f6   : > { %v1473_v48 = vpop.eup %1472  ;;  %v1090_v58 = vsel %vm987_vm1, %v1471_v45, 0.0 }
 0x1f7   : > { %v1475_v50 = vpop.eup %1474  ;;  %v1087_v51 = vadd.f32 %v1086_v49, %v1085_v46  ;;  %v1092_v63 = vsel %vm987_vm1, %v1473_v48, 0.0 }
 0x1f8   : > { %v1477_v52 = vpop.eup %1476  ;;  %v1094_v4 = vsel %vm987_vm1, %v1475_v50, 0.0 }
 0x1f9   : > { %v1479_v54 = vpop.eup %1478  ;;  %v1089_v55 = vadd.f32 %v1088_v53, %v1087_v51  ;;  %v1066_v56 = vsel %vm987_vm1, %v1477_v52, 0.0 }
 0x1fa   : > { %v1481_v57 = vpop.eup %1480  ;;  %v1067_v59 = vsel %vm987_vm1, %v1479_v54, 0.0 }
 0x1fb   : > { %v1483_v60 = vpop.eup %1482  ;;  %v1091_v61 = vadd.f32 %v1090_v58, %v1089_v55  ;;  %v1068_v62 = vadd.f32 %v1067_v59, %v1066_v56  ;;  %v1069_v0 = vsel %vm987_vm1, %v1481_v57, 0.0 }
 0x1fc   : > { %v1485_v1 = vpop.eup %1484  ;;  %v1071_v13 = vsel %vm987_vm1, %v1483_v60, 0.0 }
 0x1fd   : > { %v1093_v2 = vadd.f32 %v1092_v63, %v1091_v61  ;;  %v1070_v3 = vadd.f32 %v1069_v0, %v1068_v62  ;;  %v1487_v14 = vpop.eup %1486  ;;  %v1073_v19 = vsel %vm987_vm1, %v1485_v1, 0.0 }
 0x1fe   : > { %v1489_v20 = vpop.eup %1488  ;;  %v1075_v28 = vsel %vm987_vm1, %v1487_v14, 0.0 }
 0x1ff   : > { %v1095_v15 = vadd.f32 %v1094_v4, %v1093_v2  ;;  %v1072_v17 = vadd.f32 %v1071_v13, %v1070_v3  ;;  %v1491_v29 = vpop.eup %1490  ;;  %v1077_v31 = vsel %vm987_vm1, %v1489_v20, 0.0 }
 0x200   : > { %v1079_v33 = vsel %vm987_vm1, %v1491_v29, 0.0 }
 0x201   : > { %1492 = vlog2.f32 %v1095_v15  ;;  %v1074_v24 = vadd.f32 %v1073_v19, %v1072_v17 }
 0x203   : > { %v1076_v30 = vadd.f32 %v1075_v28, %v1074_v24 }
 0x205   : > { %v1078_v32 = vadd.f32 %v1077_v31, %v1076_v30 }
 0x207   : > { %v1080_v34 = vadd.f32 %v1079_v33, %v1078_v32 }
 0x209   : > { %1494 = vlog2.f32 %v1080_v34 }
 0x20b   : > { %v1493_v35 = vpop.eup %1492 }
 0x20c   : > { %v1099_v36 = vmul.f32 0.6931472, %v1493_v35 }
 0x20e   : > { %v1101_v37 = vsub.f32 %v1708_v5, %v1099_v36  ;;  %v1103_v38 = vsub.f32 %v1710_v6, %v1099_v36  ;;  %v1105_v39 = vsub.f32 %v1712_v7, %v1099_v36  ;;  %v1107_v40 = vsub.f32 %v1714_v8, %v1099_v36 }
 0x20f   : > { %v1109_v41 = vsub.f32 %v1716_v9, %v1099_v36  ;;  %v1111_v42 = vsub.f32 %v1718_v10, %v1099_v36  ;;  %v1113_v43 = vsub.f32 %v1720_v11, %v1099_v36  ;;  %v1115_v44 = vsub.f32 %v1722_v12, %v1099_v36 }
 0x210   : > { %1117 = vst.msk [vmem:[%s215_s18 + $0x8] sm:$0xff] %vm987_vm1, %v1101_v37  ;;  %1119 = vst.msk [vmem:[%s215_s18 + $0x18] sm:$0xff] %vm987_vm1, %v1103_v38 }
 0x211   : > { %1121 = vst.msk [vmem:[%s215_s18 + $0x28] sm:$0xff] %vm987_vm1, %v1105_v39  ;;  %1123 = vst.msk [vmem:[%s215_s18 + $0x38] sm:$0xff] %vm987_vm1, %v1107_v40 }
 0x212   : > { %1125 = vst.msk [vmem:[%s215_s18 + $0x48] sm:$0xff] %vm987_vm1, %v1109_v41  ;;  %1127 = vst.msk [vmem:[%s215_s18 + $0x58] sm:$0xff] %vm987_vm1, %v1111_v42 }
 0x213   : > { %1129 = vst.msk [vmem:[%s215_s18 + $0x68] sm:$0xff] %vm987_vm1, %v1113_v43  ;;  %1131 = vst.msk [vmem:[%s215_s18 + $0x78] sm:$0xff] %vm987_vm1, %v1115_v44  ;;  %v1495_v5 = vpop.eup %1494 }
 0x214   : > { %v1097_v6 = vmul.f32 0.6931472, %v1495_v5 }
 0x216   : > { %v1100_v7 = vsub.f32 %v1727_v16, %v1097_v6  ;;  %v1102_v8 = vsub.f32 %v1730_v18, %v1097_v6  ;;  %v1104_v9 = vsub.f32 %v1734_v21, %v1097_v6  ;;  %v1106_v10 = vsub.f32 %v1736_v22, %v1097_v6 }
 0x217   : > { %v1108_v11 = vsub.f32 %v1738_v23, %v1097_v6  ;;  %v1110_v12 = vsub.f32 %v1740_v25, %v1097_v6  ;;  %v1112_v16 = vsub.f32 %v1743_v27, %v1097_v6  ;;  %v1114_v18 = vsub.f32 %v1745_v26, %v1097_v6 }
 0x218   : > { %1116 = vst.msk [vmem:[%s215_s18] sm:$0xff] %vm987_vm1, %v1100_v7  ;;  %1118 = vst.msk [vmem:[%s215_s18 + $0x10] sm:$0xff] %vm987_vm1, %v1102_v8 }
 0x219   : > { %1120 = vst.msk [vmem:[%s215_s18 + $0x20] sm:$0xff] %vm987_vm1, %v1104_v9  ;;  %1122 = vst.msk [vmem:[%s215_s18 + $0x30] sm:$0xff] %vm987_vm1, %v1106_v10 }
 0x21a   : > { %1124 = vst.msk [vmem:[%s215_s18 + $0x40] sm:$0xff] %vm987_vm1, %v1108_v11  ;;  %1126 = vst.msk [vmem:[%s215_s18 + $0x50] sm:$0xff] %vm987_vm1, %v1110_v12 }
 0x21b   : > { %1128 = vst.msk [vmem:[%s215_s18 + $0x60] sm:$0xff] %vm987_vm1, %v1112_v16  ;;  %1130 = vst.msk [vmem:[%s215_s18 + $0x70] sm:$0xff] %vm987_vm1, %v1114_v18 }
 0x21c   : > { %1509 = shalt.err (!%p1506_p5)
}
 0x21d   : > { %s1510_s5 = scalar_lea.hbm %s1799_s27, 2048  ;;  %s1514_s8 = scalar_lea.hbm %s1866_s3, 4096 }
 0x21e   : > { %p1511_p6 = scmp.ne.s32.totalorder %s1799_s27, %s1510_s5  ;;  %p1515_p10 = scmp.lt.u32.totalorder %s1799_s27, %s1866_s3 }
 0x21f   : > { %p1516_p11 = scmp.lt.u32.totalorder %s1514_s8, %s1510_s5  ;;  %p1518_p13 = scmp.lt.u32.totalorder %s1510_s5, %s1799_s27 }
 0x220   : > { %p1512_p7 = pnand %p1511_p6, %p1639_p4 }
 0x221   : > { %p1517_p12 = por %p1516_p11, %p1515_p10 }
 0x222   : > { %p1513_p9 = pneg %p1512_p7 }
 0x223   : > { %p1519_p0 = por %p1518_p13, %p1517_p12 }
 0x225   : > { %p1520_p1 = pnand %p1519_p0, %p1513_p9 }
 0x227   : > { %1523 = shalt.err (!%p1520_p1)
}
 0x228   : > { %s1577_s11 = smov 128   ;;  %s1578_s18 = smov 8  }
 0x229   : > { %1403 = dma.vmem_to_hbm [thread:$0]  (%p1639_p4), %s1801_s21, 2048, %s1799_s27, %s1817_s15, %s1577_s11, %s1577_s11, %s1578_s18  }
 0x22a PF: > { %p1409_p2 = scmp.ge.s32.totalorder %s1574_s17, 2  ;;  %s1164_s19 = sand.u32 1, %s1554_s12  }
 0x22b   : > { %s1165_s23 = scalar_lea.sflag [#allocation3], %s1164_s19 }
 0x22c   : > { %p1406_p3 = pnand %p1409_p2, %p1646_p8 }
 0x22e   : > { %1549 = dma.done.wait (!%p1406_p3), %s1165_s23, 2048  }
 0x22f   : > { %1551 = vsyncadd (!%p1406_p3), %s1165_s23, 4294965248  ;;  %s16_s17 = sadd.s32 1, %s1574_s17   ;;  %s1869_s12 = smov %s1558_s13 }
 0x230   : > { %p13_p5 = scmp.ge.s32.totalorder %s16_s17, 4   ;;  %s1870_s13 = smov %s1562_s14 }
 0x231   : > { %s1871_s14 = smov %s1652_s25  ;;  %s1872_s15 = smov %s1570_s16 }
 0x232   : > { %s1873_s16 = smov %s1875_s20  ;;  %15 = sbr.rel (!%p13_p5) target bundleno = 4 (0x4), region = 73 }
 0x239   :  { %1170 = vsyncpa [#allocation3], 1 }
 0x23a   :  { %1172 = vsyncpa [#allocation3 + $0x1], 1 }

</bundles_post_ra>
